<compile_context>
chip_gen: v7x
topology: tpu7x:2x2x1
jax: 0.10.0
libtpu: 0.0.40
codegen_flags: <defaults>
</compile_context>

<pallas_src>
import functools

import jax
import jax.numpy as jnp
import numpy as np
from jax.experimental import pallas as pl
from jax.experimental.pallas import tpu as pltpu

GRU_ITERATIONS = 4       # TODO(synk): undefined global in the PyTorch source -> fixed to 4
CASCADING_LOSS = 0.85    # module default
_LANES = 128
_MAX_TILE_ROWS = 512     # 512 * 128 * 4 B = 256 KiB per stream per tile


# ---------------------------------------------------------------------------
# Tiling / padding helpers
# ---------------------------------------------------------------------------
def _round_up(x, m):
    return ((x + m - 1) // m) * m


def _tiling(n_elems, tr_max=_MAX_TILE_ROWS):
    rows = -(-n_elems // _LANES)                 # ceil-div to lane rows
    tr = min(tr_max, _round_up(rows, 8))         # tile rows, multiple of 8
    rows_padded = _round_up(rows, tr)            # grid divides evenly
    return tr, rows_padded


def _prep(x, rows_padded):
    """Flatten to f32, zero-pad, reshape to lane-dense (rows_padded, 128)."""
    flat = jnp.asarray(x, jnp.float32).reshape(-1)
    pad = rows_padded * _LANES - flat.shape[0]
    if pad:
        flat = jnp.pad(flat, (0, pad))           # zeros contribute 0 to L1 / MSE sums
    return flat.reshape(rows_padded, _LANES)


# ---------------------------------------------------------------------------
# Kernels
# ---------------------------------------------------------------------------
def _cascade_kernel(*refs, weights):
    """Fused 4-iteration weighted-L1 partial sum for one (TR, 128) row tile."""
    *flow_refs, curr_ref, gt_ref, out_ref = refs
    base = curr_ref[...] - gt_ref[...]                       # hoisted; curr/gt read once
    acc = weights[0] * jnp.abs(flow_refs[0][...] + base)
    for w, f_ref in zip(weights[1:], flow_refs[1:]):
        acc = acc + w * jnp.abs(f_ref[...] + base)
    # Per-tile partial reduction (TR, 128) -> (8, 128): leading-axis VPU adds only.
    out_ref[...] = jnp.sum(acc.reshape(-1, 8, _LANES), axis=0)


def _mse_kernel(curr_ref, flow_ref, out_ref):
    """Sum-of-squares partial for one (TR, 128) row tile (computed literally)."""
    estim = curr_ref[...] + flow_ref[...]
    diff = estim - flow_ref[...]
    out_ref[...] = jnp.sum((diff * diff).reshape(-1, 8, _LANES), axis=0)


# ---------------------------------------------------------------------------
# Wrapper
# ---------------------------------------------------------------------------
def cascading_l1_loss(curr_flow, flow_tup, flow_gt, cascading=CASCADING_LOSS):
    """JAX/Pallas equivalent of CascadingL1Loss.forward."""
    if isinstance(flow_tup, (list, tuple)):
        assert len(flow_tup) >= GRU_ITERATIONS, (
            "flow_tup must have at least GRU_ITERATIONS entries")
        n_elems = int(np.prod(curr_flow.shape))
        tr, rows_padded = _tiling(n_elems)
        num_tiles = rows_padded // tr

        flows = [_prep(flow_tup[i], rows_padded) for i in range(GRU_ITERATIONS)]
        curr2 = _prep(curr_flow, rows_padded)
        gt2 = _prep(flow_gt, rows_padded)

        # Trace-time constant weights: cascading ** (GRU_iterations - i)
        weights = tuple(
            float(cascading) ** (GRU_ITERATIONS - i) for i in range(GRU_ITERATIONS)
        )

        tile_spec = pl.BlockSpec((tr, _LANES), lambda t: (t, 0))
        partials = pl.pallas_call(
            functools.partial(_cascade_kernel, weights=weights),
            out_shape=jax.ShapeDtypeStruct((num_tiles * 8, _LANES), jnp.float32),
            grid_spec=pltpu.PrefetchScalarGridSpec(
                num_scalar_prefetch=0,
                grid=(num_tiles,),
                in_specs=[tile_spec] * (GRU_ITERATIONS + 2),
                out_specs=pl.BlockSpec((8, _LANES), lambda t: (t, 0)),
            ),
            compiler_params=pltpu.CompilerParams(
                dimension_semantics=("parallel",)),
        )(*flows, curr2, gt2)
        # Tiny final reduction over per-tile partials.
        return jnp.sum(partials).reshape(1)

    # Tensor branch: MSE(curr_flow + flow_tup, flow_tup), computed literally.
    n_elems = int(np.prod(curr_flow.shape))
    tr, rows_padded = _tiling(n_elems)
    num_tiles = rows_padded // tr

    curr2 = _prep(curr_flow, rows_padded)
    flow2 = _prep(flow_tup, rows_padded)

    tile_spec = pl.BlockSpec((tr, _LANES), lambda t: (t, 0))
    partials = pl.pallas_call(
        _mse_kernel,
        out_shape=jax.ShapeDtypeStruct((num_tiles * 8, _LANES), jnp.float32),
        grid_spec=pltpu.PrefetchScalarGridSpec(
            num_scalar_prefetch=0,
            grid=(num_tiles,),
            in_specs=[tile_spec, tile_spec],
            out_specs=pl.BlockSpec((8, _LANES), lambda t: (t, 0)),
        ),
        compiler_params=pltpu.CompilerParams(
            dimension_semantics=("parallel",)),
    )(curr2, flow2)
    return jnp.sum(partials) / jnp.float32(n_elems)   # mean over ORIGINAL element count


# ---------------------------------------------------------------------------
# Reference (pure JAX) for correctness check
# ---------------------------------------------------------------------------
def _reference(curr_flow, flow_tup, flow_gt, cascading=CASCADING_LOSS):
    if isinstance(flow_tup, (list, tuple)):
        aggr = 0.0
        for i in range(GRU_ITERATIONS):
            aggr += (cascading ** (GRU_ITERATIONS - i)) * jnp.sum(
                jnp.abs(flow_tup[i] + curr_flow - flow_gt))
        return jnp.asarray(aggr, jnp.float32).reshape(1)
    estim = curr_flow + flow_tup
    return jnp.mean((estim - flow_tup) ** 2)


# ---------------------------------------------------------------------------
if __name__ == "__main__":
    key = jax.random.PRNGKey(0)

    # First shape is the small "happy" case; second exercises the zero-padding
    # path (1800 elements, not a multiple of 128).
    for shape in [(2, 2, 16, 16), (1, 2, 30, 30)]:
        key, k_curr, k_gt, *k_iters = jax.random.split(key, 3 + GRU_ITERATIONS)
        curr_flow = jax.random.normal(k_curr, shape, jnp.float32)
        flow_gt = jax.random.normal(k_gt, shape, jnp.float32)
        flow_list = [jax.random.normal(k, shape, jnp.float32) for k in k_iters]

        # Cascading (list) branch.
        loss_cascade = jax.block_until_ready(
            cascading_l1_loss(curr_flow, flow_list, flow_gt))
        ref_cascade = _reference(curr_flow, flow_list, flow_gt)
        np.testing.assert_allclose(
            np.asarray(loss_cascade), np.asarray(ref_cascade),
            rtol=1e-4, atol=1e-4)

        # Tensor branch (MSE path).
        loss_mse = jax.block_until_ready(
            cascading_l1_loss(curr_flow, flow_list[0], flow_gt))
        ref_mse = _reference(curr_flow, flow_list[0], flow_gt)
        np.testing.assert_allclose(
            np.asarray(loss_mse), np.asarray(ref_mse),
            rtol=1e-5, atol=1e-5)

    print("KERNEL_OK")
</pallas_src>

<mosaic_0001>
module attributes {stable_mosaic.version = 11 : i64} {
  func.func @_cascade_kernel(%arg0: i32, %arg1: memref<8x128xf32, #tpu.memory_space<vmem>>, %arg2: memref<8x128xf32, #tpu.memory_space<vmem>>, %arg3: memref<8x128xf32, #tpu.memory_space<vmem>>, %arg4: memref<8x128xf32, #tpu.memory_space<vmem>>, %arg5: memref<8x128xf32, #tpu.memory_space<vmem>>, %arg6: memref<8x128xf32, #tpu.memory_space<vmem>>, %arg7: memref<8x128xf32, #tpu.memory_space<vmem>>) attributes {dimension_semantics = [#tpu.dimension_semantics<parallel>], iteration_bounds = array<i64: 1>, scalar_prefetch = 0 : i64, scratch_operands = 0 : i64, tpu.core_type = #tpu.core_type<tc>, window_params = [{transform_indices = @transform_0, window_bounds = array<i64: 8, 128>}, {transform_indices = @transform_1, window_bounds = array<i64: 8, 128>}, {transform_indices = @transform_2, window_bounds = array<i64: 8, 128>}, {transform_indices = @transform_3, window_bounds = array<i64: 8, 128>}, {transform_indices = @transform_4, window_bounds = array<i64: 8, 128>}, {transform_indices = @transform_5, window_bounds = array<i64: 8, 128>}, {transform_indices = @transform_6, window_bounds = array<i64: 8, 128>}]} {
    %c0 = arith.constant 0 : index
    %c0_0 = arith.constant 0 : index
    %0 = vector.load %arg5[%c0, %c0_0] : memref<8x128xf32, #tpu.memory_space<vmem>>, vector<8x128xf32>
    %c0_1 = arith.constant 0 : index
    %c0_2 = arith.constant 0 : index
    %1 = vector.load %arg6[%c0_1, %c0_2] : memref<8x128xf32, #tpu.memory_space<vmem>>, vector<8x128xf32>
    %2 = arith.subf %0, %1 : vector<8x128xf32>
    %c0_3 = arith.constant 0 : index
    %c0_4 = arith.constant 0 : index
    %3 = vector.load %arg1[%c0_3, %c0_4] : memref<8x128xf32, #tpu.memory_space<vmem>>, vector<8x128xf32>
    %4 = arith.addf %3, %2 : vector<8x128xf32>
    %5 = math.absf %4 : vector<8x128xf32>
    %cst = arith.constant 0.522006273 : f32
    %6 = vector.broadcast %cst : f32 to vector<8x128xf32>
    %7 = arith.mulf %6, %5 : vector<8x128xf32>
    %c0_5 = arith.constant 0 : index
    %c0_6 = arith.constant 0 : index
    %8 = vector.load %arg2[%c0_5, %c0_6] : memref<8x128xf32, #tpu.memory_space<vmem>>, vector<8x128xf32>
    %9 = arith.addf %8, %2 : vector<8x128xf32>
    %10 = math.absf %9 : vector<8x128xf32>
    %cst_7 = arith.constant 6.141250e-01 : f32
    %11 = vector.broadcast %cst_7 : f32 to vector<8x128xf32>
    %12 = arith.mulf %11, %10 : vector<8x128xf32>
    %13 = arith.addf %7, %12 : vector<8x128xf32>
    %c0_8 = arith.constant 0 : index
    %c0_9 = arith.constant 0 : index
    %14 = vector.load %arg3[%c0_8, %c0_9] : memref<8x128xf32, #tpu.memory_space<vmem>>, vector<8x128xf32>
    %15 = arith.addf %14, %2 : vector<8x128xf32>
    %16 = math.absf %15 : vector<8x128xf32>
    %cst_10 = arith.constant 7.225000e-01 : f32
    %17 = vector.broadcast %cst_10 : f32 to vector<8x128xf32>
    %18 = arith.mulf %17, %16 : vector<8x128xf32>
    %19 = arith.addf %13, %18 : vector<8x128xf32>
    %c0_11 = arith.constant 0 : index
    %c0_12 = arith.constant 0 : index
    %20 = vector.load %arg4[%c0_11, %c0_12] : memref<8x128xf32, #tpu.memory_space<vmem>>, vector<8x128xf32>
    %21 = arith.addf %20, %2 : vector<8x128xf32>
    %22 = math.absf %21 : vector<8x128xf32>
    %cst_13 = arith.constant 8.500000e-01 : f32
    %23 = vector.broadcast %cst_13 : f32 to vector<8x128xf32>
    %24 = arith.mulf %23, %22 : vector<8x128xf32>
    %25 = arith.addf %19, %24 : vector<8x128xf32>
    %26 = vector.shape_cast %25 : vector<8x128xf32> to vector<1x8x128xf32>
    %cst_14 = arith.constant dense<0.000000e+00> : vector<8x128xf32>
    %27 = vector.multi_reduction <add>, %26, %cst_14 [0] : vector<1x8x128xf32> to vector<8x128xf32>
    %c0_15 = arith.constant 0 : index
    %c0_16 = arith.constant 0 : index
    %28 = vector.load %arg7[%c0_15, %c0_16] : memref<8x128xf32, #tpu.memory_space<vmem>>, vector<8x128xf32>
    tpu.vector_store %arg7[%c0_15, %c0_16], %27 {strides = array<i32>} : memref<8x128xf32, #tpu.memory_space<vmem>>, vector<8x128xf32>,
    return
  }
  func.func @transform_0(%arg0: i32) -> (i32, i32) {
    %c0_i32 = arith.constant 0 : i32
    %c0_i32_0 = arith.constant 0 : i32
    return %arg0, %c0_i32 : i32, i32
  }
  func.func @transform_1(%arg0: i32) -> (i32, i32) {
    %c0_i32 = arith.constant 0 : i32
    %c0_i32_0 = arith.constant 0 : i32
    return %arg0, %c0_i32 : i32, i32
  }
  func.func @transform_2(%arg0: i32) -> (i32, i32) {
    %c0_i32 = arith.constant 0 : i32
    %c0_i32_0 = arith.constant 0 : i32
    return %arg0, %c0_i32 : i32, i32
  }
  func.func @transform_3(%arg0: i32) -> (i32, i32) {
    %c0_i32 = arith.constant 0 : i32
    %c0_i32_0 = arith.constant 0 : i32
    return %arg0, %c0_i32 : i32, i32
  }
  func.func @transform_4(%arg0: i32) -> (i32, i32) {
    %c0_i32 = arith.constant 0 : i32
    %c0_i32_0 = arith.constant 0 : i32
    return %arg0, %c0_i32 : i32, i32
  }
  func.func @transform_5(%arg0: i32) -> (i32, i32) {
    %c0_i32 = arith.constant 0 : i32
    %c0_i32_0 = arith.constant 0 : i32
    return %arg0, %c0_i32 : i32, i32
  }
  func.func @transform_6(%arg0: i32) -> (i32, i32) {
    %c0_i32 = arith.constant 0 : i32
    %c0_i32_0 = arith.constant 0 : i32
    return %arg0, %c0_i32 : i32, i32
  }
}

</mosaic_0001>

<bundles_post_ra>
// kernel: tpu_custom_call.1
= control target key start
LH: loop header
LB: loop body
LE: loop exit
PB: predicated region body
PF: predicated region fallthrough
CT: control target
= control target key end

     0   :  { %11 = vsyncpa [#allocation3], 0  ;;  %s341_s0 = inlined_call_operand.hbm [shape: f32[8,128], index: 0, kind: input, shape index: {}]   ;;  %s342_s1 = inlined_call_operand.hbm [shape: f32[8,128], index: 1, kind: input, shape index: {}]   ;;  %s343_s2 = inlined_call_operand.hbm [shape: f32[8,128], index: 2, kind: input, shape index: {}]   ;;  %s344_s3 = inlined_call_operand.vmem [shape: f32[8,128], index: 3, kind: input, shape index: {}]   ;;  %s345_s4 = inlined_call_operand.hbm [shape: f32[8,128], index: 4, kind: input, shape index: {}]   ;;  %s346_s5 = inlined_call_operand.vmem [shape: f32[8,128], index: 5, kind: input, shape index: {}]   ;;  %s347_s6 = inlined_call_operand.hbm [shape: f32[8,128], index: 6, kind: output, shape index: {}]  }
   0x1   :  { %12 = vsyncpa [#allocation6], 0 }
   0x2   :  { %13 = vsyncpa [#allocation9], 0 }
   0x3   :  { %14 = vsyncpa [#allocation4], 0  ;;  %s235_s21 = smov [#allocation5]   ;;  %s236_s23 = smov [#allocation2]  }
   0x4   :  { %s31_s22 = sshll.u32 %s235_s21, 4  ;;  %s21_s24 = sshll.u32 %s236_s23, 4  ;;  %s32_s22 = int_to_ptr.vmem [resolvable:$true] %s31_s22  ;;  %s22_s24 = int_to_ptr.vmem [resolvable:$true] %s21_s24 }
   0x5   :  { %s117_s27 = scalar_lea.hbm %s342_s1, 128 }
   0x6   :  { %p118_p0 = scmp.ne.s32.totalorder %s342_s1, %s117_s27  ;;  %p121_p1 = scmp.lt.u32.totalorder %s117_s27, %s342_s1 }
   0x8   :  { %p123_p2 = pnand %p121_p1, %p118_p0 }
   0xa   :  { %126 = shalt.err (!%p123_p2)
}
   0xb   :  { %s127_s8 = scalar_lea.vmem %s32_s22, 128  ;;  %p132_p4 = scmp.lt.s32.totalorder %s32_s22, %s32_s22 }
   0xc   :  { %p128_p3 = scmp.ne.s32.totalorder %s32_s22, %s127_s8  ;;  %p133_p5 = scmp.lt.s32.totalorder %s127_s8, %s127_s8 }
   0xe   :  { %p134_p6 = por %p133_p5, %p132_p4 }
  0x10   :  { %p135_p7 = pnand %p134_p6, %p128_p3 }
  0x12   :  { %138 = shalt.err (!%p135_p7)
}
  0x13   :  { %34 = dma.hbm_to_vmem [thread:$0]  %s342_s1, 128, %s32_s22, [#allocation6]  }
  0x14   :  { %s139_s13 = scalar_lea.hbm %s341_s0, 128 }
  0x15   :  { %p140_p8 = scmp.ne.s32.totalorder %s341_s0, %s139_s13  ;;  %p143_p9 = scmp.lt.u32.totalorder %s139_s13, %s341_s0 }
  0x17   :  { %p145_p10 = pnand %p143_p9, %p140_p8 }
  0x19   :  { %148 = shalt.err (!%p145_p10)
}
  0x1a   :  { %s149_s18 = scalar_lea.vmem %s22_s24, 128  ;;  %p154_p12 = scmp.lt.s32.totalorder %s22_s24, %s22_s24 }
  0x1b   :  { %p150_p11 = scmp.ne.s32.totalorder %s22_s24, %s149_s18  ;;  %p155_p13 = scmp.lt.s32.totalorder %s149_s18, %s149_s18 }
  0x1d   :  { %p156_p0 = por %p155_p13, %p154_p12 }
  0x1f   :  { %p157_p1 = pnand %p156_p0, %p150_p11 }
  0x21   :  { %160 = shalt.err (!%p157_p1)
}
  0x22   :  { %24 = dma.hbm_to_vmem [thread:$0]  %s341_s0, 128, %s22_s24, [#allocation3]  }
  0x23   :  { %s237_s20 = smov [#allocation7]   ;;  %s238_s22 = smov [#allocation8]  }
  0x24   :  { %s41_s21 = sshll.u32 %s237_s20, 4  ;;  %s53_s23 = sshll.u32 %s238_s22, 4  ;;  %s42_s21 = int_to_ptr.vmem [resolvable:$true] %s41_s21  ;;  %s54_s23 = int_to_ptr.vmem [resolvable:$true] %s53_s23 }
  0x25   :  { %s161_s27 = scalar_lea.hbm %s343_s2, 128 }
  0x26   :  { %p162_p2 = scmp.ne.s32.totalorder %s343_s2, %s161_s27  ;;  %p165_p3 = scmp.lt.u32.totalorder %s161_s27, %s343_s2 }
  0x28   :  { %p167_p4 = pnand %p165_p3, %p162_p2 }
  0x2a   :  { %170 = shalt.err (!%p167_p4)
}
  0x2b   :  { %s171_s0 = scalar_lea.vmem %s42_s21, 128  ;;  %p176_p6 = scmp.lt.s32.totalorder %s42_s21, %s42_s21 }
  0x2c   :  { %p172_p5 = scmp.ne.s32.totalorder %s42_s21, %s171_s0  ;;  %p177_p7 = scmp.lt.s32.totalorder %s171_s0, %s171_s0 }
  0x2e   :  { %p178_p8 = por %p177_p7, %p176_p6 }
  0x30   :  { %p179_p9 = pnand %p178_p8, %p172_p5 }
  0x32   :  { %182 = shalt.err (!%p179_p9)
}
  0x33   :  { %44 = dma.hbm_to_vmem [thread:$0]  %s343_s2, 128, %s42_s21, [#allocation6]  }
  0x34   :  { %s183_s11 = scalar_lea.hbm %s345_s4, 128 }
  0x35   :  { %p184_p10 = scmp.ne.s32.totalorder %s345_s4, %s183_s11  ;;  %p187_p11 = scmp.lt.u32.totalorder %s183_s11, %s345_s4 }
  0x37   :  { %p189_p12 = pnand %p187_p11, %p184_p10 }
  0x39   :  { %192 = shalt.err (!%p189_p12)
}
  0x3a   :  { %s193_s16 = scalar_lea.vmem %s54_s23, 128  ;;  %p198_p0 = scmp.lt.s32.totalorder %s54_s23, %s54_s23 }
  0x3b   :  { %p194_p13 = scmp.ne.s32.totalorder %s54_s23, %s193_s16  ;;  %p199_p1 = scmp.lt.s32.totalorder %s193_s16, %s193_s16 }
  0x3d   :  { %p200_p2 = por %p199_p1, %p198_p0 }
  0x3f   :  { %p201_p3 = pnand %p200_p2, %p194_p13 }
  0x41   :  { %204 = shalt.err (!%p201_p3)
}
  0x42   :  { %56 = dma.hbm_to_vmem [thread:$0]  %s345_s4, 128, %s54_s23, [#allocation9]  }
  0x43   :  { %227 = dma.done.wait [#allocation3], 128  }
  0x44   :  { %228 = vsyncadd [#allocation3], 4294967168 }
  0x45   :  { %229 = dma.done.wait [#allocation6], 256  }
  0x46   :  { %230 = vsyncadd [#allocation6], 4294967040 }
  0x47   :  { %231 = dma.done.wait [#allocation9], 128  }
  0x48   :  { %232 = vsyncadd [#allocation9], 4294967168  ;;  %v71_v0 = vld [vmem:[#allocation8] sm:$0xff]  ;;  %v72_v1 = vld [vmem:[%s346_s5] sm:$0xff]  ;;  %s239_s4 = smov [#allocation10]  }
  0x49   :  { %v74_v2 = vld [vmem:[#allocation2] sm:$0xff]  ;;  %v73_v3 = vsub.f32 %v71_v0, %v72_v1  ;;  %v78_v4 = vld [vmem:[#allocation5] sm:$0xff]  ;;  %v83_v5 = vld [vmem:[#allocation7] sm:$0xff]  ;;  %s101_s5 = sshll.u32 %s239_s4, 4  ;;  %s102_s5 = int_to_ptr.vmem [resolvable:$true] %s101_s5 }
  0x4a   :  { %v88_v6 = vld [vmem:[%s344_s3] sm:$0xff]  ;;  %s205_s3 = scalar_lea.vmem %s102_s5, 128  ;;  %p210_p5 = scmp.lt.s32.totalorder %s102_s5, %s102_s5 }
  0x4b   :  { %v75_v7 = vadd.f32 %v74_v2, %v73_v3  ;;  %v79_v8 = vadd.f32 %v78_v4, %v73_v3  ;;  %v84_v9 = vadd.f32 %v83_v5, %v73_v3  ;;  %v89_v10 = vadd.f32 %v88_v6, %v73_v3  ;;  %p206_p4 = scmp.ne.s32.totalorder %s102_s5, %s205_s3  ;;  %p211_p6 = scmp.lt.s32.totalorder %s205_s3, %s205_s3 }
  0x4d   :  { %v76_v11 = vand.u32 2147483647, %v75_v7  ;;  %v80_v12 = vand.u32 2147483647, %v79_v8  ;;  %v85_v13 = vand.u32 2147483647, %v84_v9  ;;  %p212_p7 = por %p211_p6, %p210_p5 }
  0x4e   :  { %v90_v14 = vand.u32 2147483647, %v89_v10 }
  0x4f   :  { %v77_v15 = vmul.f32 0.5220063, %v76_v11  ;;  %v81_v16 = vmul.f32 0.614125, %v80_v12  ;;  %v86_v17 = vmul.f32 0.7225, %v85_v13  ;;  %p213_p8 = pnand %p212_p7, %p206_p4 }
  0x50   :  { %v91_v19 = vmul.f32 0.85, %v90_v14 }
  0x51   :  { %v82_v18 = vadd.f32 %v81_v16, %v77_v15 }
  0x53   :  { %v87_v20 = vadd.f32 %v86_v17, %v82_v18 }
  0x55   :  { %v92_v21 = vadd.f32 %v91_v19, %v87_v20 }
  0x57   :  { %94 = vst [vmem:[#allocation10] sm:$0xff] %v92_v21 }
  0x58   :  { %216 = shalt.err (!%p213_p8)
}
  0x59   :  { %s217_s23 = scalar_lea.hbm %s347_s6, 128 }
  0x5a   :  { %p218_p9 = scmp.ne.s32.totalorder %s347_s6, %s217_s23  ;;  %p221_p10 = scmp.lt.u32.totalorder %s217_s23, %s347_s6 }
  0x5c   :  { %p223_p11 = pnand %p221_p10, %p218_p9 }
  0x5e   :  { %226 = shalt.err (!%p223_p11)
}
  0x5f   :  { %104 = dma.vmem_to_hbm [thread:$0]  %s102_s5, 128, %s347_s6, [#allocation4]  }
  0x60   :  { %233 = dma.done.wait [#allocation4], 128  }
  0x61   :  { %234 = vsyncadd [#allocation4], 4294967168 }
  0x62   :  { %108 = vsyncpa [#allocation3], 1 }
  0x63   :  { %109 = vsyncpa [#allocation6], 1 }
  0x64   :  { %110 = vsyncpa [#allocation9], 1 }
  0x65   :  { %111 = vsyncpa [#allocation4], 1 }

</bundles_post_ra>
